<compile_context>
chip_gen: v7x
topology: tpu7x:2x2x1
jax: 0.10.0
libtpu: 0.0.40
codegen_flags: <defaults>
</compile_context>

<pallas_src>
import jax
import jax.numpy as jnp
from jax import lax
from jax.experimental import pallas as pl
from jax.experimental.pallas import tpu as pltpu

_LANE = 128


def _round_up(x, m):
    return (x + m - 1) // m * m


def _sublane_pack(dtype):
    # Sub-32-bit dtypes pack along sublanes: 8 rows f32, 16 bf16, 32 int8.
    return max(8, 32 // jnp.dtype(dtype).itemsize)


def _vmem_capacity_bytes():
    try:
        return int(pltpu.get_tpu_info().vmem_capacity_bytes)
    except Exception:
        return 64 * 1024 * 1024  # v7x-safe fallback


def _pick_row_tiling(rows, tm_cap, min_row):
    """Pick a row-tile size TM and the padded row count rows_p.

    Ensures TM is a multiple of the sublane packing, does not exceed tm_cap,
    and -- when the row count allows -- produces at least two row tiles so a
    v7x megacore can split the "parallel" axis across its two TensorCores.
    """
    tm_cap = max(min_row, tm_cap // min_row * min_row)
    TM = min(tm_cap, _round_up(rows, min_row))
    if rows <= TM and rows > min_row:
        TM = _round_up((rows + 1) // 2, min_row)
    rows_p = _round_up(rows, TM)
    return TM, rows_p


# ----------------------------------------------------------------------------
# Kernels
# ----------------------------------------------------------------------------
def _proj_kernel_resident(x_ref, w1_ref, b1_ref, w2_ref, b2_ref, o_ref):
    # x: (TM, Hp)  w1: (F, Hp)  b1: (1, F)  w2: (Hp, F)  b2: (1, Hp)  o: (TM, Hp)
    # Weights stay resident in VMEM (constant index_map); no accumulator.
    h = lax.dot_general(
        x_ref[...], w1_ref[...],
        dimension_numbers=(((1,), (1,)), ((), ())),
        preferred_element_type=jnp.float32)
    h = jnp.maximum(h + b1_ref[...].astype(jnp.float32), 0.0)
    o = lax.dot_general(
        h.astype(w2_ref.dtype), w2_ref[...],
        dimension_numbers=(((1,), (1,)), ((), ())),
        preferred_element_type=jnp.float32)
    o_ref[...] = (o + b2_ref[...].astype(jnp.float32)).astype(o_ref.dtype)


def _proj_kernel_ftiled(x_ref, w1_ref, b1_ref, w2_ref, b2_ref, o_ref, acc_ref):
    # x: (TM, Hp)  w1: (TF, Hp)  b1: (1, TF)  w2: (Hp, TF)  b2: (1, Hp)
    # acc: (TM, Hp) f32 scratch, persistent across the (innermost) F axis.
    f = pl.program_id(1)

    @pl.when(f == 0)
    def _():
        acc_ref[...] = jnp.zeros_like(acc_ref)

    h = lax.dot_general(
        x_ref[...], w1_ref[...],
        dimension_numbers=(((1,), (1,)), ((), ())),
        preferred_element_type=jnp.float32)
    h = jnp.maximum(h + b1_ref[...].astype(jnp.float32), 0.0)
    acc_ref[...] += lax.dot_general(
        h.astype(w2_ref.dtype), w2_ref[...],
        dimension_numbers=(((1,), (1,)), ((), ())),
        preferred_element_type=jnp.float32)

    @pl.when(f == pl.num_programs(1) - 1)
    def _():
        o_ref[...] = (acc_ref[...] +
                      b2_ref[...].astype(jnp.float32)).astype(o_ref.dtype)


# ----------------------------------------------------------------------------
# Wrapper
# ----------------------------------------------------------------------------
def proj_forward(x, w1, b1, w2, b2, *, cast_to_bf16=False,
                 _force_f_tiled=False, _max_tf=2048):
    """Applies the Proj MLP: relu(x @ W1^T + b1) @ W2^T + b2.

    x : (..., H)
    w1: (2H, H), b1: (2H,)   -- PyTorch nn.Linear (out, in) convention
    w2: (H, 2H), b2: (H,)

    cast_to_bf16: cast x/W1/W2 to bf16 before the kernel (f32 accumulation is
    kept in-kernel).  Biggest HBM/MXU lever; off by default so f32 callers
    get bit-faithful f32 results.
    """
    H = x.shape[-1]
    F = 2 * H
    assert w1.shape == (F, H) and b1.shape == (F,)
    assert w2.shape == (H, F) and b2.shape == (H,)

    out_dtype = x.dtype
    out_isz = jnp.dtype(out_dtype).itemsize
    if cast_to_bf16:
        x = x.astype(jnp.bfloat16)
        w1 = w1.astype(jnp.bfloat16)
        w2 = w2.astype(jnp.bfloat16)

    lead = x.shape[:-1]
    rows = 1
    for d in lead:
        rows *= d
    x2d = x.reshape(rows, H)

    # Lane-dense feature dim: pad H to a multiple of 128 so output stores are
    # unmasked `vst` and the MXU contraction is full-lane.  Padded columns /
    # rows are zeros -> results unchanged; they are sliced off at the end.
    Hp = _round_up(H, _LANE)
    if Hp != H:
        x2d = jnp.pad(x2d, ((0, 0), (0, Hp - H)))
        w1 = jnp.pad(w1, ((0, 0), (0, Hp - H)))   # (F, Hp): zero input cols
        w2 = jnp.pad(w2, ((0, Hp - H), (0, 0)))   # (Hp, F): zero output rows
        b2 = jnp.pad(b2, ((0, Hp - H),))

    b1_2d = b1.reshape(1, F)
    b2_2d = b2.reshape(1, Hp)

    dx = x2d.dtype.itemsize
    dw = w1.dtype.itemsize
    db = b1.dtype.itemsize
    min_row = _sublane_pack(x2d.dtype)

    vmem_cap = _vmem_capacity_bytes()          # generation-aware (64/128 MiB)
    vmem_budget = int(vmem_cap * 0.75)         # headroom for Mosaic internals

    # --- Path selection ------------------------------------------------------
    # (a) weights-resident: hold W1, W2, biases in VMEM for the whole call.
    # (b) F-tiled: stream (TF, Hp) weight tiles over an inner reduction axis.
    w_resident_bytes = (2 * (w1.size + w2.size) * dw          # 2x: buffering
                        + 2 * (b1_2d.size + b2_2d.size) * db)
    row_bytes_res = 2 * Hp * dx + 2 * Hp * out_isz + F * 4    # x, out, f32 h
    max_tm_res = (vmem_budget - w_resident_bytes) // row_bytes_res

    if max_tm_res >= min_row and not _force_f_tiled:
        # -------------------- weights-resident fast path ---------------------
        tm_cap = min(512, int(max_tm_res))
        TM, rows_p = _pick_row_tiling(rows, tm_cap, min_row)
        if rows_p != rows:
            x2d = jnp.pad(x2d, ((0, rows_p - rows), (0, 0)))
        grid = (rows_p // TM,)

        est = w_resident_bytes + TM * row_bytes_res
        vmem_limit = int(min(vmem_cap, max(32 * 1024 * 1024, int(1.5 * est))))
        flops = 4 * rows_p * Hp * F
        bytes_accessed = int(rows_p * Hp * (dx + out_isz)
                             + (w1.size + w2.size) * dw
                             + (b1_2d.size + b2_2d.size) * db)

        out2d = pl.pallas_call(
            _proj_kernel_resident,
            out_shape=jax.ShapeDtypeStruct((rows_p, Hp), out_dtype),
            grid_spec=pltpu.PrefetchScalarGridSpec(
                num_scalar_prefetch=0,
                grid=grid,
                in_specs=[
                    pl.BlockSpec((TM, Hp), lambda i: (i, 0)),   # x rows
                    pl.BlockSpec((F, Hp), lambda i: (0, 0)),    # W1 resident
                    pl.BlockSpec((1, F), lambda i: (0, 0)),     # b1 resident
                    pl.BlockSpec((Hp, F), lambda i: (0, 0)),    # W2 resident
                    pl.BlockSpec((1, Hp), lambda i: (0, 0)),    # b2 resident
                ],
                out_specs=pl.BlockSpec((TM, Hp), lambda i: (i, 0)),
            ),
            compiler_params=pltpu.CompilerParams(
                dimension_semantics=("parallel",),
                vmem_limit_bytes=vmem_limit,
            ),
            cost_estimate=pl.CostEstimate(
                flops=int(flops), transcendentals=0,
                bytes_accessed=bytes_accessed),
        )(x2d, w1, b1_2d, w2, b2_2d)

    else:
        # ----------------------- F-tiled accumulator path --------------------
        target_tm = 1024 if dx <= 2 else 512    # roofline-sized row tile

        def _fixed_bytes(tf):     # double-buffered weight tiles + biases
            return 4 * tf * Hp * dw + 2 * (tf + Hp) * db

        def _per_row_bytes(tf):   # x (2 buf) + out (2 buf) + f32 acc + f32 h
            return 2 * Hp * dx + 2 * Hp * out_isz + Hp * 4 + tf * 4

        def _max_tm(tf):
            return (vmem_budget - _fixed_bytes(tf)) // _per_row_bytes(tf)

        # Prefer a 128-aligned divisor of F so no padded weight copy is
        # materialized in HBM; pad only when no such divisor exists.
        divisors = [t for t in range(_LANE, min(F, _max_tf) + 1, _LANE)
                    if F % t == 0]
        if divisors:
            candidates = divisors
        else:
            candidates = [t for t in (1024, 512, 256, 128)
                          if t <= _round_up(F, _LANE) and t <= max(_max_tf, _LANE)]

        rows_cap = _round_up(rows, min_row)
        TF = None
        for t in sorted(candidates, reverse=True):
            if _max_tm(t) >= min(target_tm, rows_cap):
                TF = t
                break
        if TF is None:
            TF = max(candidates, key=_max_tm)
        tm_cap = max(min_row, min(target_tm, int(_max_tm(TF))))
        TM, rows_p = _pick_row_tiling(rows, tm_cap, min_row)
        if rows_p != rows:
            x2d = jnp.pad(x2d, ((0, rows_p - rows), (0, 0)))

        if F % TF == 0:
            F_p, w1_t, b1_t, w2_t = F, w1, b1_2d, w2
        else:
            # Padded F columns are exactly zero contributions (relu(0)=0 times
            # zero W2 columns), so results are unchanged.
            F_p = _round_up(F, TF)
            w1_t = jnp.pad(w1, ((0, F_p - F), (0, 0)))
            b1_t = jnp.pad(b1_2d, ((0, 0), (0, F_p - F)))
            w2_t = jnp.pad(w2, ((0, 0), (0, F_p - F)))

        grid = (rows_p // TM, F_p // TF)

        est = _fixed_bytes(TF) + TM * _per_row_bytes(TF)
        vmem_limit = int(min(vmem_cap, max(32 * 1024 * 1024, int(1.5 * est))))
        flops = 4 * rows_p * Hp * F_p
        bytes_accessed = int(rows_p * Hp * (dx + out_isz)
                             + grid[0] * ((w1_t.size + w2_t.size) * dw
                                          + b1_t.size * db)
                             + b2_2d.size * db)

        out2d = pl.pallas_call(
            _proj_kernel_ftiled,
            out_shape=jax.ShapeDtypeStruct((rows_p, Hp), out_dtype),
            grid_spec=pltpu.PrefetchScalarGridSpec(
                num_scalar_prefetch=0,
                grid=grid,
                in_specs=[
                    pl.BlockSpec((TM, Hp), lambda i, f: (i, 0)),  # x rows
                    pl.BlockSpec((TF, Hp), lambda i, f: (f, 0)),  # W1 tile
                    pl.BlockSpec((1, TF), lambda i, f: (0, f)),   # b1 tile
                    pl.BlockSpec((Hp, TF), lambda i, f: (0, f)),  # W2 tile
                    pl.BlockSpec((1, Hp), lambda i, f: (0, 0)),   # b2
                ],
                out_specs=pl.BlockSpec((TM, Hp), lambda i, f: (i, 0)),
                scratch_shapes=[pltpu.VMEM((TM, Hp), jnp.float32)],
            ),
            compiler_params=pltpu.CompilerParams(
                dimension_semantics=("parallel", "arbitrary"),
                vmem_limit_bytes=vmem_limit,
            ),
            cost_estimate=pl.CostEstimate(
                flops=int(flops), transcendentals=0,
                bytes_accessed=bytes_accessed),
        )(x2d, w1_t, b1_t, w2_t, b2_2d)

    out2d = out2d[:rows, :H]
    return out2d.reshape(*lead, H)


if __name__ == "__main__":
    # Small synthetic config: batch=2, seq=8, hidden=32.
    batch, seq, hidden = 2, 8, 32

    key = jax.random.PRNGKey(0)
    k_x, k_w1, k_b1, k_w2, k_b2 = jax.random.split(key, 5)

    x = jax.random.normal(k_x, (batch, seq, hidden), dtype=jnp.float32)

    # Deterministic parameter init (PyTorch nn.Linear convention: (out, in)).
    scale1 = 1.0 / jnp.sqrt(hidden)
    scale2 = 1.0 / jnp.sqrt(2 * hidden)
    w1 = jax.random.uniform(k_w1, (2 * hidden, hidden),
                            minval=-scale1, maxval=scale1, dtype=jnp.float32)
    b1 = jax.random.uniform(k_b1, (2 * hidden,),
                            minval=-scale1, maxval=scale1, dtype=jnp.float32)
    w2 = jax.random.uniform(k_w2, (hidden, 2 * hidden),
                            minval=-scale2, maxval=scale2, dtype=jnp.float32)
    b2 = jax.random.uniform(k_b2, (hidden,),
                            minval=-scale2, maxval=scale2, dtype=jnp.float32)

    ref = jnp.maximum(x @ w1.T + b1, 0.0) @ w2.T + b2

    # 1) f32, weights-resident fast path (H lane-padded to 128).
    out = jax.block_until_ready(proj_forward(x, w1, b1, w2, b2))
    assert out.shape == x.shape
    assert jnp.allclose(out, ref, atol=1e-4, rtol=1e-4)

    # 2) bf16 operands (recommended production config), f32 accumulation.
    out_bf16 = jax.block_until_ready(
        proj_forward(x, w1, b1, w2, b2, cast_to_bf16=True))
    assert jnp.allclose(out_bf16, ref, atol=1e-1, rtol=1e-1)

    # 3) F-tiled accumulator path (forced here at a small shape; normally it
    #    only triggers when W1/W2 do not fit in VMEM).
    hidden2 = 128
    k2 = jax.random.split(jax.random.PRNGKey(1), 5)
    x2 = jax.random.normal(k2[0], (batch, seq, hidden2), dtype=jnp.float32)
    s1 = 1.0 / jnp.sqrt(hidden2)
    s2 = 1.0 / jnp.sqrt(2 * hidden2)
    w1b = jax.random.uniform(k2[1], (2 * hidden2, hidden2),
                             minval=-s1, maxval=s1, dtype=jnp.float32)
    b1b = jax.random.uniform(k2[2], (2 * hidden2,),
                             minval=-s1, maxval=s1, dtype=jnp.float32)
    w2b = jax.random.uniform(k2[3], (hidden2, 2 * hidden2),
                             minval=-s2, maxval=s2, dtype=jnp.float32)
    b2b = jax.random.uniform(k2[4], (hidden2,),
                             minval=-s2, maxval=s2, dtype=jnp.float32)
    ref2 = jnp.maximum(x2 @ w1b.T + b1b, 0.0) @ w2b.T + b2b
    out2 = jax.block_until_ready(
        proj_forward(x2, w1b, b1b, w2b, b2b, _force_f_tiled=True, _max_tf=128))
    assert jnp.allclose(out2, ref2, atol=1e-4, rtol=1e-4)

    print("KERNEL_OK")
</pallas_src>

<mosaic_0001>
module attributes {stable_mosaic.version = 11 : i64} {
  func.func @_proj_kernel_resident(%arg0: i32, %arg1: memref<8x128xf32, #tpu.memory_space<vmem>>, %arg2: memref<64x128xf32, #tpu.memory_space<vmem>>, %arg3: memref<1x64xf32, #tpu.memory_space<vmem>>, %arg4: memref<128x64xf32, #tpu.memory_space<vmem>>, %arg5: memref<1x128xf32, #tpu.memory_space<vmem>>, %arg6: memref<8x128xf32, #tpu.memory_space<vmem>>) attributes {dimension_semantics = [#tpu.dimension_semantics<parallel>], iteration_bounds = array<i64: 2>, scalar_prefetch = 0 : i64, scratch_operands = 0 : i64, tpu.core_type = #tpu.core_type<tc>, window_params = [{transform_indices = @transform_0, window_bounds = array<i64: 8, 128>}, {pipeline_mode = #tpu.pipeline_mode<synchronous>, transform_indices = @transform_1, window_bounds = array<i64: 64, 128>}, {pipeline_mode = #tpu.pipeline_mode<synchronous>, transform_indices = @transform_2, window_bounds = array<i64: 1, 64>}, {pipeline_mode = #tpu.pipeline_mode<synchronous>, transform_indices = @transform_3, window_bounds = array<i64: 128, 64>}, {pipeline_mode = #tpu.pipeline_mode<synchronous>, transform_indices = @transform_4, window_bounds = array<i64: 1, 128>}, {transform_indices = @transform_5, window_bounds = array<i64: 8, 128>}]} {
    %c0 = arith.constant 0 : index
    %c0_0 = arith.constant 0 : index
    %0 = vector.load %arg1[%c0, %c0_0] : memref<8x128xf32, #tpu.memory_space<vmem>>, vector<8x128xf32>
    %c0_1 = arith.constant 0 : index
    %c0_2 = arith.constant 0 : index
    %1 = vector.load %arg2[%c0_1, %c0_2] : memref<64x128xf32, #tpu.memory_space<vmem>>, vector<64x128xf32>
    %cst = arith.constant dense<0.000000e+00> : vector<8x64xf32>
    %2 = tpu.matmul %0, %1, %cst {dimension_numbers = #tpu.dot_dimension_numbers<[1], [1], [0], [0], [0, 0, 1, 0], [], []>} : vector<8x128xf32>, vector<64x128xf32>, vector<8x64xf32> -> vector<8x64xf32>
    %c0_3 = arith.constant 0 : index
    %c0_4 = arith.constant 0 : index
    %3 = vector.load %arg3[%c0_3, %c0_4] : memref<1x64xf32, #tpu.memory_space<vmem>>, vector<1x64xf32>
    %4 = vector.broadcast %3 : vector<1x64xf32> to vector<8x64xf32>
    %5 = arith.addf %2, %4 : vector<8x64xf32>
    %cst_5 = arith.constant 0.000000e+00 : f32
    %6 = vector.broadcast %cst_5 : f32 to vector<8x64xf32>
    %7 = arith.maximumf %5, %6 : vector<8x64xf32>
    %c0_6 = arith.constant 0 : index
    %c0_7 = arith.constant 0 : index
    %8 = vector.load %arg4[%c0_6, %c0_7] : memref<128x64xf32, #tpu.memory_space<vmem>>, vector<128x64xf32>
    %cst_8 = arith.constant dense<0.000000e+00> : vector<8x128xf32>
    %9 = tpu.matmul %7, %8, %cst_8 {dimension_numbers = #tpu.dot_dimension_numbers<[1], [1], [0], [0], [0, 0, 1, 0], [], []>} : vector<8x64xf32>, vector<128x64xf32>, vector<8x128xf32> -> vector<8x128xf32>
    %c0_9 = arith.constant 0 : index
    %c0_10 = arith.constant 0 : index
    %10 = vector.load %arg5[%c0_9, %c0_10] : memref<1x128xf32, #tpu.memory_space<vmem>>, vector<1x128xf32>
    %11 = vector.broadcast %10 : vector<1x128xf32> to vector<8x128xf32>
    %12 = arith.addf %9, %11 : vector<8x128xf32>
    %c0_11 = arith.constant 0 : index
    %c0_12 = arith.constant 0 : index
    %13 = vector.load %arg6[%c0_11, %c0_12] : memref<8x128xf32, #tpu.memory_space<vmem>>, vector<8x128xf32>
    tpu.vector_store %arg6[%c0_11, %c0_12], %12 {strides = array<i32>} : memref<8x128xf32, #tpu.memory_space<vmem>>, vector<8x128xf32>,
    return
  }
  func.func @transform_0(%arg0: i32) -> (i32, i32) {
    %c0_i32 = arith.constant 0 : i32
    %c0_i32_0 = arith.constant 0 : i32
    return %arg0, %c0_i32 : i32, i32
  }
  func.func @transform_1(%arg0: i32) -> (i32, i32) {
    %c0_i32 = arith.constant 0 : i32
    %c0_i32_0 = arith.constant 0 : i32
    %c0_i32_1 = arith.constant 0 : i32
    return %c0_i32, %c0_i32_0 : i32, i32
  }
  func.func @transform_2(%arg0: i32) -> (i32, i32) {
    %c0_i32 = arith.constant 0 : i32
    %c0_i32_0 = arith.constant 0 : i32
    %c0_i32_1 = arith.constant 0 : i32
    return %c0_i32, %c0_i32_0 : i32, i32
  }
  func.func @transform_3(%arg0: i32) -> (i32, i32) {
    %c0_i32 = arith.constant 0 : i32
    %c0_i32_0 = arith.constant 0 : i32
    %c0_i32_1 = arith.constant 0 : i32
    return %c0_i32, %c0_i32_0 : i32, i32
  }
  func.func @transform_4(%arg0: i32) -> (i32, i32) {
    %c0_i32 = arith.constant 0 : i32
    %c0_i32_0 = arith.constant 0 : i32
    %c0_i32_1 = arith.constant 0 : i32
    return %c0_i32, %c0_i32_0 : i32, i32
  }
  func.func @transform_5(%arg0: i32) -> (i32, i32) {
    %c0_i32 = arith.constant 0 : i32
    %c0_i32_0 = arith.constant 0 : i32
    return %arg0, %c0_i32 : i32, i32
  }
}

</mosaic_0001>

<bundles_post_ra>
// kernel: tpu_custom_call.1
= control target key start
LH: loop header
LB: loop body
LE: loop exit
PB: predicated region body
PF: predicated region fallthrough
CT: control target
= control target key end

     0   :  { %10 = vsyncpa [#allocation3], 0  ;;  %s1032_s0 = inlined_call_operand.vmem [shape: f32[16,128], index: 0, kind: input, shape index: {}]   ;;  %s1033_s1 = inlined_call_operand.vmem [shape: f32[64,128], index: 1, kind: input, shape index: {}]   ;;  %s1034_s2 = inlined_call_operand.vmem [shape: f32[1,64], index: 2, kind: input, shape index: {}]   ;;  %s1035_s3 = inlined_call_operand.vmem [shape: f32[128,64], index: 3, kind: input, shape index: {}]   ;;  %s1036_s4 = inlined_call_operand.vmem [shape: f32[1,128], index: 4, kind: input, shape index: {}]   ;;  %s1037_s5 = inlined_call_operand.hbm [shape: f32[16,128], index: 5, kind: output, shape index: {}]  }
   0x1   :  { %12 = vsyncpa [#allocation3 + $0x1], 0  ;;  %s819_s18 = smov 0   ;;  %s821_s19 = smov 0  }
   0x2   :  { %s823_s20 = smov 0   ;;  %s825_s21 = smov 0  }
   0x3 LB: > { %s840_s22 = sadd.s32 4294967295, %s783_s21   ;;  %s526_s23 = sadd.s32 4294967294, %s783_s21   ;;  %s783_s21 = sphi %s825_s21, %s1045_s21   ;;  %s779_s20 = sphi %s823_s20, %s1044_s20   ;;  %s775_s19 = sphi %s821_s19, %s1043_s19   ;;  %s771_s18 = sphi %s819_s18, %s1042_s18  }
   0x4   : > { %s844_s24 = sadd.s32 1, %s783_s21   ;;  %s135_s25 = sadd.s32 1, %s779_s20 }
   0x5   : > { %s132_s26 = ssub.s32 %s783_s21, %s844_s24  ;;  %p145_p0 = scmp.ne.s32.totalorder %s779_s20, %s775_s19 }
   0x6   : > { %p133_p1 = scmp.eq.s32.totalorder %s132_s26, 0  ;;  %p146_p2 = scmp.eq.s32.totalorder %s840_s22, 1 }
   0x7   : > { %p151_p3 = scmp.ne.s32.totalorder %s775_s19, %s771_s18  ;;  %p152_p4 = scmp.eq.s32.totalorder %s526_s23, 1 }
   0x8   : > { %s855_s27 = scalar_select %p133_p1, %s779_s20, %s135_s25  }
   0x9   : > { %p857_p5 = por %p146_p2, %p145_p0  ;;  %p861_p6 = por %p152_p4, %p151_p3 }
   0xa   : > { %p529_p7 = scmp.ge.s32.totalorder %s783_s21, 1  ;;  %p189_p8 = scmp.lt.s32.totalorder %s783_s21, 3 }
   0xc   : > { %p190_p9 = pnand %p529_p7, %p189_p8 }
   0xd   : > { %v221_v0 = vld [vmem:[%s1033_s1] sm:$0xff] (!%p190_p9)  ;;  %v222_v1 = vld [vmem:[%s1033_s1 + $0x8] sm:$0xff] (!%p190_p9)  ;;  %v785_v2 = vmov (!%p190_p9), 0.0|0.0   ;;  %vm786_vm0 = vmmov (!%p190_p9), 0   ;;  %v787_v4 = vmov (!%p190_p9), 0.0   ;;  %vm330_vm1 = vcmask (!%p190_p9), 523264  }
   0xe   : > { %193 = sbr.rel (%p190_p9) target bundleno = 491 (0x1eb), region = 40  ;;  %635 = vmatprep.subr.bf16.mxu0 (!%p190_p9), %v785_v2  ;;  %v636_v3 = vpack.c.bf16 (!%p190_p9), %v222_v1, %v221_v0  ;;  %597 = vmatprep.mubr.msk.f32.mxu0 (!%p190_p9), %vm786_vm0, %v787_v4  ;;  %v307_v5 = vld [vmem:[%s1035_s3] sm:$0xff] (!%p190_p9)  ;;  %v308_v6 = vld [vmem:[%s1035_s3 + $0x8] sm:$0xff] (!%p190_p9)  ;;  %vm883_vm2 = vmpackc.low (!%p190_p9), %vm330_vm1, %vm330_vm1  ;;  %p216_p10 = scmp.lt.s32.totalorder (!%p190_p9), %s840_s22, 1 }
   0xf   : > { %647 = vmatprep.subr.bf16.mxu1 (!%p190_p9), %v785_v2  ;;  %632 = vmatprep.mubr.msk.f32.mxu1 (!%p190_p9), %vm786_vm0, %v787_v4  ;;  %v223_v8 = vld [vmem:[%s1033_s1 + $0x10] sm:$0xff] (!%p190_p9)  ;;  %v224_v9 = vld [vmem:[%s1033_s1 + $0x18] sm:$0xff] (!%p190_p9)  ;;  %v648_v10 = vpack.c.bf16 (!%p190_p9), %v308_v6, %v307_v5  ;;  %v225_v15 = vld [vmem:[%s1033_s1 + $0x20] sm:$0xff] (!%p190_p9)  ;;  %s213_s12 = sand.u32 (!%p190_p9), 1, %s775_s19   ;;  %s552_s16 = sshll.u32 (!%p190_p9), %s840_s22, 7 }
  0x10   : > { %637 = vmatpush3.bf16.xpose.msra.mxu0 (!%p190_p9), %v636_v3  ;;  %v639_v11 = vpack.c.bf16 (!%p190_p9), %v224_v9, %v223_v8  ;;  %v309_v12 = vld [vmem:[%s1035_s3 + $0x10] sm:$0xff] (!%p190_p9)  ;;  %v310_v13 = vld [vmem:[%s1035_s3 + $0x18] sm:$0xff] (!%p190_p9)  ;;  %v226_v16 = vld [vmem:[%s1033_s1 + $0x28] sm:$0xff] (!%p190_p9)  ;;  %s530_s13 = sshll.u32 (!%p190_p9), %s213_s12, 3  ;;  %s990_s30 = scalar_lea.hbm (!%p190_p9), %s1037_s5, %s552_s16 }
  0x11   : > { %638 = vmatprep.subr.bf16.mxu0 (!%p190_p9), %v785_v2  ;;  %650 = vmatpush3.bf16.xpose.msk.msra.mxu1 (!%p190_p9), %vm883_vm2, %v648_v10  ;;  %v652_v14 = vpack.c.bf16 (!%p190_p9), %v310_v13, %v309_v12  ;;  %v642_v17 = vpack.c.bf16 (!%p190_p9), %v226_v16, %v225_v15  ;;  %v311_v18 = vld [vmem:[%s1035_s3 + $0x20] sm:$0xff] (!%p190_p9)  ;;  %v312_v19 = vld [vmem:[%s1035_s3 + $0x28] sm:$0xff] (!%p190_p9)  ;;  %v227_v21 = vld [vmem:[%s1033_s1 + $0x30] sm:$0xff] (!%p190_p9) }
  0x12   : > { %651 = vmatprep.subr.bf16.mxu1 (!%p190_p9), %v785_v2  ;;  %v656_v20 = vpack.c.bf16 (!%p190_p9), %v312_v19, %v311_v18  ;;  %v228_v22 = vld [vmem:[%s1033_s1 + $0x38] sm:$0xff] (!%p190_p9)  ;;  %v313_v24 = vld [vmem:[%s1035_s3 + $0x30] sm:$0xff] (!%p190_p9)  ;;  %v315_v28 = vld [vmem:[%s1035_s3 + $0x40] sm:$0xff] (!%p190_p9) }
  0x13   : > { %v645_v23 = vpack.c.bf16 (!%p190_p9), %v228_v22, %v227_v21  ;;  %v314_v25 = vld [vmem:[%s1035_s3 + $0x38] sm:$0xff] (!%p190_p9)  ;;  %v316_v29 = vld [vmem:[%s1035_s3 + $0x48] sm:$0xff] (!%p190_p9)  ;;  %v317_v31 = vld [vmem:[%s1035_s3 + $0x50] sm:$0xff] (!%p190_p9) }
  0x14   : > { %v660_v26 = vpack.c.bf16 (!%p190_p9), %v314_v25, %v313_v24  ;;  %v664_v30 = vpack.c.bf16 (!%p190_p9), %v316_v29, %v315_v28  ;;  %v318_v32 = vld [vmem:[%s1035_s3 + $0x58] sm:$0xff] (!%p190_p9)  ;;  %v319_v34 = vld [vmem:[%s1035_s3 + $0x60] sm:$0xff] (!%p190_p9)  ;;  %v320_v35 = vld [vmem:[%s1035_s3 + $0x68] sm:$0xff] (!%p190_p9) }
  0x15   : > { %s217_s17 = scalar_select %p216_p10, %s840_s22, 1  ;;  %v668_v33 = vpack.c.bf16 %v318_v32, %v317_v31  ;;  %v672_v36 = vpack.c.bf16 %v320_v35, %v319_v34  ;;  %v321_v37 = vld [vmem:[%s1035_s3 + $0x70] sm:$0xff]  ;;  %v322_v38 = vld [vmem:[%s1035_s3 + $0x78] sm:$0xff]  ;;  %v532_v40 = vld [vmem:[%s1034_s2] ss:$0 sm:$0xff] }
  0x16   : > { %v676_v39 = vpack.c.bf16 %v322_v38, %v321_v37  ;;  %v533_v45 = vld [vmem:[%s1036_s4] ss:$0 sm:$0xff]  ;;  %s788_s22 = smov [#allocation2]  }
  0x17   : > { %s531_s6 = sshll.u32 %s217_s17, 3  ;;  %s215_s17 = scalar_lea.vmem [#allocation2], %s530_s13 }
  0x18   : > { %640 = vmatpush3.bf16.xpose.msra.mxu0 %v639_v11  ;;  %s219_s9 = scalar_lea.vmem %s1032_s0, %s531_s6  ;;  %s467_s23 = sshll.u32 %s215_s17, 4  ;;  %s992_s23 = int_to_ptr.vmem [resolvable:$true] %s467_s23 }
  0x19   : > { %641 = vmatprep.subr.bf16.mxu0 %v785_v2  ;;  %654 = vmatpush3.bf16.xpose.msk.msra.mxu1 %vm883_vm2, %v652_v14  ;;  %v220_v27 = vld [vmem:[%s219_s9] sm:$0xff]  ;;  %s454_s6 = scalar_lea.sflag [#allocation3], %s213_s12  ;;  %s721_s7 = scalar_lea.vmem %s992_s23, 128 }
  0x1a   : > { %655 = vmatprep.subr.bf16.mxu1 %v785_v2  ;;  %p722_p11 = scmp.ne.s32.totalorder %s992_s23, %s721_s7  ;;  %s725_s8 = sshll.u32 %s788_s22, 4  ;;  %s726_s8 = int_to_ptr.vmem [resolvable:$false] %s725_s8 }
  0x1b   : > { %s727_s9 = scalar_lea.vmem %s726_s8, 256  ;;  %p728_p0 = scmp.lt.s32.totalorder %s992_s23, %s726_s8 }
  0x1c   : > { %p723_p12 = pnand %p722_p11, %p857_p5  ;;  %p729_p1 = scmp.lt.s32.totalorder %s727_s9, %s721_s7 }
  0x1e   : > { %p724_p13 = pneg %p723_p12  ;;  %p730_p2 = por %p729_p1, %p728_p0 }
  0x20   : > { %643 = vmatpush3.bf16.xpose.msra.mxu0 %v642_v17  ;;  %p731_p3 = pnand %p730_p2, %p724_p13 }
  0x21   : > { %644 = vmatprep.subr.bf16.mxu0 %v785_v2  ;;  %658 = vmatpush3.bf16.xpose.msk.msra.mxu1 %vm883_vm2, %v656_v20 }
  0x22   : > { %659 = vmatprep.subr.bf16.mxu1 %v785_v2 }
  0x28   : > { %646 = vmatpush3.bf16.xpose.msra.mxu0 %v645_v23 }
  0x29   : > { %662 = vmatpush3.bf16.xpose.msk.msra.mxu1 %vm883_vm2, %v660_v26 }
  0x2a   : > { %663 = vmatprep.subr.bf16.mxu1 %v785_v2 }
  0x2f   : > { %598 = vmatmul.mubr.f32.vlgmr.msra.gmra.mrb[0].mxu0 %v220_v27 }
  0x31   : > { %666 = vmatpush3.bf16.xpose.msk.msra.mxu1 %vm883_vm2, %v664_v30 }
  0x32   : > { %667 = vmatprep.subr.bf16.mxu1 %v785_v2 }
  0x39   : > { %670 = vmatpush3.bf16.xpose.msk.msra.mxu1 %vm883_vm2, %v668_v33 }
  0x3a   : > { %671 = vmatprep.subr.bf16.mxu1 %v785_v2 }
  0x41   : > { %674 = vmatpush3.bf16.xpose.msk.msra.mxu1 %vm883_vm2, %v672_v36 }
  0x42   : > { %675 = vmatprep.subr.bf16.mxu1 %v785_v2 }
  0x49   : > { %678 = vmatpush3.bf16.xpose.msk.msra.mxu1 %vm883_vm2, %v676_v39 }
 0x102   : > { %v302_v41 = vpop.f32.mrb[0].mxu0 }
 0x103   : > { %v303_v42 = vadd.f32 %v532_v40, %v302_v41  ;;  %v599_v43 = vpop.f32.mrb[1].mxu0 }
 0x105   : > { %v306_v44 = vmax.f32 %v303_v42, 0.0 }
 0x107   : > { %633 = vmatmul.mubr.msk.f32.vlgmr.msra.gmra.mrb[0].mxu1 %vm330_vm1, %v306_v44 }
 0x1da   : > { %v448_v46 = vpop.f32.mrb[0].mxu1 }
 0x1db   : > { %v449_v47 = vadd.f32 %v533_v45, %v448_v46  ;;  %v634_v48 = vpop.f32.mrb[1].mxu1 }
 0x1dd   : > { %452 = vst [vmem:[%s215_s17] sm:$0xff] %v449_v47 }
 0x1de   : > { %734 = shalt.err (!%p731_p3)
}
 0x1df   : > { %s735_s10 = scalar_lea.hbm %s990_s30, 128  ;;  %s739_s13 = scalar_lea.hbm %s1037_s5, 256 }
 0x1e0   : > { %p736_p4 = scmp.ne.s32.totalorder %s990_s30, %s735_s10  ;;  %p740_p9 = scmp.lt.u32.totalorder %s990_s30, %s1037_s5 }
 0x1e1   : > { %p741_p10 = scmp.lt.u32.totalorder %s739_s13, %s735_s10  ;;  %p743_p12 = scmp.lt.u32.totalorder %s735_s10, %s990_s30 }
 0x1e2   : > { %p737_p7 = pnand %p736_p4, %p857_p5 }
 0x1e3   : > { %p742_p11 = por %p741_p10, %p740_p9 }
 0x1e4   : > { %p738_p8 = pneg %p737_p7 }
 0x1e5   : > { %p744_p13 = por %p743_p12, %p742_p11 }
 0x1e7   : > { %p745_p0 = pnand %p744_p13, %p738_p8 }
 0x1e9   : > { %748 = shalt.err (!%p745_p0)
}
 0x1ea   : > { %679 = dma.vmem_to_hbm [thread:$0]  (%p857_p5), %s992_s23, 128, %s990_s30, %s454_s6  }
 0x1eb PF: > { %p685_p1 = scmp.ge.s32.totalorder %s783_s21, 2  ;;  %s479_s16 = sand.u32 1, %s771_s18  }
 0x1ec   : > { %s480_s17 = scalar_lea.sflag [#allocation3], %s479_s16 }
 0x1ed   : > { %p682_p2 = pnand %p685_p1, %p861_p6 }
 0x1ef   : > { %766 = dma.done.wait (!%p682_p2), %s480_s17, 128  }
 0x1f0   : > { %768 = vsyncadd (!%p682_p2), %s480_s17, 4294967168  ;;  %p15_p3 = scmp.ge.s32.totalorder %s844_s24, 4   ;;  %s1042_s18 = smov %s775_s19 }
 0x1f1   : > { %s1043_s19 = smov %s779_s20  ;;  %s1044_s20 = smov %s855_s27 }
 0x1f2   : > { %s1045_s21 = smov %s844_s24  ;;  %17 = sbr.rel (!%p15_p3) target bundleno = 3 (0x3), region = 75 }
 0x1f9   :  { %485 = vsyncpa [#allocation3], 1 }
 0x1fa   :  { %487 = vsyncpa [#allocation3 + $0x1], 1 }

</bundles_post_ra>
